<compile_context>
chip_gen: v7x
topology: tpu7x:2x2x1
jax: 0.10.0
libtpu: 0.0.40
codegen_flags: <defaults>
</compile_context>

<pallas_src>
import functools

import jax
import jax.numpy as jnp
from jax import lax
from jax.experimental import pallas as pl
from jax.experimental.pallas import tpu as pltpu


def spatial_linear_kernel(x_ref, w_ref, b_ref, o_ref, *,
                          mxu_bf16, adj_bf16, flatten_linear):
    # x_ref: (Bb, N, D) block of the input batch.
    xf = x_ref[...].astype(jnp.float32)                       # (Bb, N, D)
    xm = xf.astype(jnp.bfloat16) if mxu_bf16 else xf

    # adj = relu(x @ x^T): contract the last dims directly (batch dim 0) so the MXU
    # is fed without materializing an XLU transpose of the (N, D) tile.
    adj = lax.dot_general(
        xm, xm,
        dimension_numbers=(((2,), (2,)), ((0,), (0,))),
        preferred_element_type=jnp.float32)                   # (Bb, N, N) f32 acc
    adj = jnp.maximum(adj, 0.0)

    # torch: row_sum = adj.sum(dim=1); adj = adj / row_sum.unsqueeze(1), i.e. column j
    # scaled by 1 / sum_i adj[i, j].  relu(x x^T) is exactly symmetric (f32 MXU
    # accumulation, identical contraction order), so the column sums equal the row
    # sums; reduce along axis=2 so the (Bb, N, 1) result already sits with N on
    # sublanes, matching the xf broadcast layout (no lane->sublane relayout).
    # NOTE: only valid while the adjacency construction stays symmetric.
    col_sum = jnp.sum(adj, axis=2, keepdims=True)             # (Bb, N, 1)
    inv = pl.reciprocal(col_sum, approx=True)                 # EUP slot, ~free
    # Fold the column normalization into x:  adj @ (x * inv) == (adj / colsum) @ x
    # -> N*D multiplies instead of N^2 divides, no N x N rewrite.
    x_scaled = xf * inv                                       # (Bb, N, D)

    if mxu_bf16 and adj_bf16:
        adj_m = adj.astype(jnp.bfloat16)
        xs = x_scaled.astype(jnp.bfloat16)
    else:
        adj_m, xs = adj, x_scaled                             # f32 path (default)

    out = lax.dot_general(                                    # (Bb, N, D) f32 acc
        adj_m, xs,
        dimension_numbers=(((2,), (1,)), ((0,), (0,))),
        preferred_element_type=jnp.float32)

    # Linear: out @ W (+ b).  w_ref holds the torch weight already transposed (D, H)
    # and pre-cast wrapper-side (bf16 on the fast path), so no in-kernel cast of W.
    w = w_ref[...]
    out_m = out.astype(w.dtype)
    if flatten_linear:
        bb, n, d = out_m.shape
        h = w.shape[1]
        # One big (Bb*N, D) @ (D, H) matmul instead of Bb small N-row matmuls:
        # better systolic-array occupancy on the 256-row MXUs.
        out_lin = lax.dot_general(
            out_m.reshape(bb * n, d), w,
            dimension_numbers=(((1,), (0,)), ((), ())),
            preferred_element_type=jnp.float32)
        out_lin = out_lin.reshape(bb, n, h)
    else:
        out_lin = lax.dot_general(
            out_m, w,
            dimension_numbers=(((2,), (0,)), ((), ())),
            preferred_element_type=jnp.float32)               # (Bb, N, H)

    out_lin = out_lin + b_ref[...]                            # (1, H) broadcasts
    out_lin = jnp.tanh(out_lin)                               # EUP
    # TODO(synk): Dropout(0.5) is identity in eval mode; training-mode mask
    # (pltpu.prng_random_bits) intentionally omitted.
    # Residual (H == D): re-read x_ref here instead of holding xf live across all
    # three matmuls (shorter live range, fewer spills at large block_b).
    out_lin = out_lin + x_ref[...].astype(jnp.float32)

    # TODO(synk): with H < 128 this store is lane-masked; see module-level TODO about
    # padding D/H to a 128-multiple / lane-dense output slab for production shapes.
    o_ref[...] = out_lin.astype(o_ref.dtype)


def _tpu_kind():
    try:
        return jax.devices()[0].device_kind.lower()
    except Exception:
        return ""


def _vmem_capacity_bytes(kind):
    try:
        return int(pltpu.get_tpu_info().vmem_capacity_bytes)
    except Exception:
        pass
    # Fallback from the device-kind string: v7x has 64 MiB per TC, older parts 128 MiB.
    return (64 if "v7" in kind else 128) * 2**20


def _has_two_tensorcores(kind):
    # 2-TC / megacore parts benefit from >= 2 grid steps on the parallel axis;
    # on single-TC v5e/v6e the grid is a serial loop, so splitting only adds overhead.
    return any(tag in kind for tag in ("v7", "v4", "v5p"))


def _choose_block_b(B, N, D, H, budget_bytes, two_tc):
    """Batch elements per grid step: as many as fit the VMEM budget; only keep the
    grid >= 2 steps (for core sharding) on parts with 2 TensorCores."""
    per_b = 4 * (3 * N * D + 3 * N * H + 2 * N * N)   # rough f32 working set / batch
    bb = max(1, min(B, budget_bytes // max(per_b, 1)))
    if two_tc and B >= 2:
        bb = min(bb, pl.cdiv(B, 2))
    while B % bb:                                      # bb must divide B exactly
        bb -= 1
    return bb


def _step_vmem_bytes(bb, N, D, H):
    f32 = 4
    io = 2 * f32 * (bb * N * D + bb * N * H)           # double-buffered x / out tiles
    params = 2 * f32 * (D * H + H)                     # weight + bias (upper bound)
    work = f32 * (2 * bb * N * N + 2 * bb * N * D + 2 * bb * N * H)   # adj + temps
    return io + params + work


def spatial_linear(x, w_t, bias, *, residual=True, mxu_bf16=True, adj_bf16=False,
                   block_b=None):
    """x: (B, N, D) f32; w_t: (D, H) = torch weight transposed; bias: (H,)."""
    assert residual, "non-residual path not exercised here"
    B, N, D = x.shape
    H = w_t.shape[1]
    assert H == D, "residual add requires hidden_size == input_size"

    kind = _tpu_kind()
    capacity = _vmem_capacity_bytes(kind)
    two_tc = _has_two_tensorcores(kind)

    # Pre-cast the weight wrapper-side: halves its HBM/DMA bytes on the bf16 path and
    # removes a per-grid-step D*H VPU cast inside the kernel.
    w_in = w_t.astype(jnp.bfloat16) if mxu_bf16 else w_t.astype(jnp.float32)
    bias2d = bias.reshape(1, H).astype(jnp.float32)

    if block_b is None:
        block_b = _choose_block_b(B, N, D, H,
                                  budget_bytes=(3 * capacity) // 8,
                                  two_tc=two_tc)
    assert B % block_b == 0
    grid = (B // block_b,)

    step_bytes = _step_vmem_bytes(block_b, N, D, H)
    # Scoped VMEM limit: generous vs. the per-step working set, capped at ~75% of the
    # chip's physical VMEM so compiler-internal scratch still has headroom (important
    # on v7x where physical VMEM is only 64 MiB).
    vmem_limit = int(max(32 * 2**20, 2 * step_bytes))
    vmem_limit = int(min(vmem_limit, (3 * capacity) // 4))

    cost = pl.CostEstimate(
        flops=int(B * (4 * N * N * D + 2 * N * D * H)),
        transcendentals=int(B * (N * H + N)),
        bytes_accessed=int(4 * (B * N * D + B * N * H + H)
                           + w_in.dtype.itemsize * D * H),
    )

    flatten_linear = (N % 8 == 0)   # leading-dim collapse is layout-trivial then

    kernel = functools.partial(spatial_linear_kernel, mxu_bf16=mxu_bf16,
                               adj_bf16=adj_bf16, flatten_linear=flatten_linear)

    return pl.pallas_call(
        kernel,
        out_shape=jax.ShapeDtypeStruct((B, N, H), x.dtype),
        grid_spec=pltpu.PrefetchScalarGridSpec(
            num_scalar_prefetch=0,
            grid=grid,
            in_specs=[
                pl.BlockSpec((block_b, N, D), lambda b: (b, 0, 0)),  # x slab
                pl.BlockSpec((D, H), lambda b: (0, 0)),              # weight (shared)
                pl.BlockSpec((1, H), lambda b: (0, 0)),              # bias (shared)
            ],
            out_specs=pl.BlockSpec((block_b, N, H), lambda b: (b, 0, 0)),
        ),
        compiler_params=pltpu.CompilerParams(
            dimension_semantics=("parallel",),
            vmem_limit_bytes=vmem_limit),
        cost_estimate=cost,
    )(x, w_in, bias2d)


def reference(x, w_t, bias):
    adj = jnp.einsum('bnd,bmd->bnm', x, x)
    adj = jnp.maximum(adj, 0.0)
    col_sum = jnp.sum(adj, axis=1, keepdims=True)   # torch sum(dim=1).unsqueeze(1)
    adj = adj / col_sum
    out = jnp.einsum('bnm,bmd->bnd', adj, x)
    out = jnp.tanh(out @ w_t + bias)
    return out + x


if __name__ == "__main__":
    B, N, D = 2, 8, 32          # batch, tokens, input_size == hidden_size
    H = D
    key = jax.random.PRNGKey(0)
    kx, kw, kb = jax.random.split(key, 3)

    x = jax.random.normal(kx, (B, N, D), dtype=jnp.float32)
    # nn.Linear(D, H): weight (H, D), bias (H,). Deterministic uniform init.
    bound = 1.0 / (D ** 0.5)
    w = jax.random.uniform(kw, (H, D), minval=-bound, maxval=bound, dtype=jnp.float32)
    b = jax.random.uniform(kb, (H,), minval=-bound, maxval=bound, dtype=jnp.float32)
    w_t = w.T                    # (D_in, H) for in-kernel out @ W^T

    ref = reference(x, w_t, b)

    # f32 MXU feeds: tight check (only the approx reciprocal deviates from reference).
    out_f32 = jax.block_until_ready(spatial_linear(x, w_t, b, mxu_bf16=False))
    assert out_f32.shape == (B, N, H)
    assert jnp.allclose(out_f32, ref, atol=5e-3, rtol=5e-3), "f32 kernel mismatch"

    # bf16 MXU feeds for x@x^T and the Linear; adj @ x_scaled stays f32 (default).
    out_bf16 = jax.block_until_ready(spatial_linear(x, w_t, b, mxu_bf16=True))
    assert out_bf16.shape == (B, N, H)
    assert jnp.allclose(out_bf16, ref, atol=1e-1, rtol=1e-1), "bf16 kernel mismatch"

    # Full-bf16 MXU path (adj also cast) — exercised for compile coverage.
    out_bf16_adj = jax.block_until_ready(
        spatial_linear(x, w_t, b, mxu_bf16=True, adj_bf16=True))
    assert out_bf16_adj.shape == (B, N, H)
    assert jnp.allclose(out_bf16_adj, ref, atol=1e-1, rtol=1e-1), "adj-bf16 mismatch"

    print("KERNEL_OK")
</pallas_src>

<mosaic_0001>
module attributes {stable_mosaic.version = 11 : i64} {
  func.func @spatial_linear_kernel(%arg0: i32, %arg1: memref<2x8x32xf32, #tpu.memory_space<vmem>>, %arg2: memref<32x32xf32, #tpu.memory_space<vmem>>, %arg3: memref<1x32xf32, #tpu.memory_space<vmem>>, %arg4: memref<2x8x32xf32, #tpu.memory_space<vmem>>) attributes {dimension_semantics = [#tpu.dimension_semantics<parallel>], iteration_bounds = array<i64: 1>, scalar_prefetch = 0 : i64, scratch_operands = 0 : i64, tpu.core_type = #tpu.core_type<tc>, window_params = [{transform_indices = @transform_0, window_bounds = array<i64: 2, 8, 32>}, {pipeline_mode = #tpu.pipeline_mode<synchronous>, transform_indices = @transform_1, window_bounds = array<i64: 32, 32>}, {pipeline_mode = #tpu.pipeline_mode<synchronous>, transform_indices = @transform_2, window_bounds = array<i64: 1, 32>}, {transform_indices = @transform_3, window_bounds = array<i64: 2, 8, 32>}]} {
    %c0 = arith.constant 0 : index
    %c0_0 = arith.constant 0 : index
    %c0_1 = arith.constant 0 : index
    %0 = vector.load %arg1[%c0, %c0_0, %c0_1] : memref<2x8x32xf32, #tpu.memory_space<vmem>>, vector<2x8x32xf32>
    %cst = arith.constant dense<0.000000e+00> : vector<2x8x8xf32>
    %1 = tpu.matmul %0, %0, %cst {dimension_numbers = #tpu.dot_dimension_numbers<[2], [2], [1], [1], [0, 0, 0, 1, 1, 1], [0], [0]>} : vector<2x8x32xf32>, vector<2x8x32xf32>, vector<2x8x8xf32> -> vector<2x8x8xf32>
    %cst_2 = arith.constant 0.000000e+00 : f32
    %2 = vector.broadcast %cst_2 : f32 to vector<2x8x8xf32>
    %3 = arith.maximumf %1, %2 : vector<2x8x8xf32>
    %cst_3 = arith.constant dense<0.000000e+00> : vector<2x8xf32>
    %4 = vector.multi_reduction <add>, %3, %cst_3 [2] : vector<2x8x8xf32> to vector<2x8xf32>
    %5 = vector.shape_cast %4 : vector<2x8xf32> to vector<2x8x1xf32>
    %6 = tpu.reciprocal %5 {approx = true} : vector<2x8x1xf32> -> vector<2x8x1xf32>
    %7 = vector.broadcast %6 : vector<2x8x1xf32> to vector<2x8x32xf32>
    %8 = arith.mulf %0, %7 : vector<2x8x32xf32>
    %cst_4 = arith.constant dense<0.000000e+00> : vector<2x8x32xf32>
    %9 = tpu.matmul %3, %8, %cst_4 {dimension_numbers = #tpu.dot_dimension_numbers<[2], [1], [1], [2], [0, 0, 0, 1, 1, 2], [0], [0]>} : vector<2x8x8xf32>, vector<2x8x32xf32>, vector<2x8x32xf32> -> vector<2x8x32xf32>
    %c0_5 = arith.constant 0 : index
    %c0_6 = arith.constant 0 : index
    %10 = vector.load %arg2[%c0_5, %c0_6] : memref<32x32xf32, #tpu.memory_space<vmem>>, vector<32x32xf32>
    %11 = vector.shape_cast %9 : vector<2x8x32xf32> to vector<16x32xf32>
    %cst_7 = arith.constant dense<0.000000e+00> : vector<16x32xf32>
    %12 = tpu.matmul %11, %10, %cst_7 {dimension_numbers = #tpu.dot_dimension_numbers<[1], [0], [0], [1], [0, 0, 1, 1], [], []>} : vector<16x32xf32>, vector<32x32xf32>, vector<16x32xf32> -> vector<16x32xf32>
    %13 = vector.shape_cast %12 : vector<16x32xf32> to vector<2x8x32xf32>
    %c0_8 = arith.constant 0 : index
    %c0_9 = arith.constant 0 : index
    %14 = vector.load %arg3[%c0_8, %c0_9] : memref<1x32xf32, #tpu.memory_space<vmem>>, vector<1x32xf32>
    %15 = vector.shape_cast %14 : vector<1x32xf32> to vector<1x1x32xf32>
    %16 = vector.broadcast %15 : vector<1x1x32xf32> to vector<2x8x32xf32>
    %17 = arith.addf %13, %16 : vector<2x8x32xf32>
    %18 = math.tanh %17 : vector<2x8x32xf32>
    %c0_10 = arith.constant 0 : index
    %c0_11 = arith.constant 0 : index
    %c0_12 = arith.constant 0 : index
    %19 = vector.load %arg1[%c0_10, %c0_11, %c0_12] : memref<2x8x32xf32, #tpu.memory_space<vmem>>, vector<2x8x32xf32>
    %20 = arith.addf %18, %19 : vector<2x8x32xf32>
    %c0_13 = arith.constant 0 : index
    %c0_14 = arith.constant 0 : index
    %c0_15 = arith.constant 0 : index
    %21 = vector.load %arg4[%c0_13, %c0_14, %c0_15] : memref<2x8x32xf32, #tpu.memory_space<vmem>>, vector<2x8x32xf32>
    tpu.vector_store %arg4[%c0_13, %c0_14, %c0_15], %20 {strides = array<i32>} : memref<2x8x32xf32, #tpu.memory_space<vmem>>, vector<2x8x32xf32>,
    return
  }
  func.func @transform_0(%arg0: i32) -> (i32, i32, i32) {
    %c0_i32 = arith.constant 0 : i32
    %c0_i32_0 = arith.constant 0 : i32
    %c0_i32_1 = arith.constant 0 : i32
    return %arg0, %c0_i32, %c0_i32_0 : i32, i32, i32
  }
  func.func @transform_1(%arg0: i32) -> (i32, i32) {
    %c0_i32 = arith.constant 0 : i32
    %c0_i32_0 = arith.constant 0 : i32
    %c0_i32_1 = arith.constant 0 : i32
    return %c0_i32, %c0_i32_0 : i32, i32
  }
  func.func @transform_2(%arg0: i32) -> (i32, i32) {
    %c0_i32 = arith.constant 0 : i32
    %c0_i32_0 = arith.constant 0 : i32
    %c0_i32_1 = arith.constant 0 : i32
    return %c0_i32, %c0_i32_0 : i32, i32
  }
  func.func @transform_3(%arg0: i32) -> (i32, i32, i32) {
    %c0_i32 = arith.constant 0 : i32
    %c0_i32_0 = arith.constant 0 : i32
    %c0_i32_1 = arith.constant 0 : i32
    return %arg0, %c0_i32, %c0_i32_0 : i32, i32, i32
  }
}

</mosaic_0001>

<bundles_post_ra>
// kernel: tpu_custom_call.1
= control target key start
LH: loop header
LB: loop body
LE: loop exit
PB: predicated region body
PF: predicated region fallthrough
CT: control target
= control target key end

     0   :  { %8 = vsyncpa [#allocation3], 0  ;;  %s705_s0 = inlined_call_operand.hbm [shape: f32[2,8,32], index: 0, kind: input, shape index: {}]   ;;  %s706_s1 = inlined_call_operand.hbm [shape: f32[32,32], index: 1, kind: input, shape index: {}]   ;;  %s707_s2 = inlined_call_operand.vmem [shape: f32[1,32], index: 2, kind: input, shape index: {}]   ;;  %s708_s3 = inlined_call_operand.hbm [shape: f32[2,8,32], index: 3, kind: output, shape index: {}]  }
   0x1   :  { %9 = vsyncpa [#allocation6], 0 }
   0x2   :  { %10 = vsyncpa [#allocation4], 0  ;;  %s618_s12 = smov [#allocation2]   ;;  %s546_s16 = scalar_lea.hbm %s705_s0, 256 }
   0x3   :  { %s16_s13 = sshll.u32 %s618_s12, 4  ;;  %p547_p0 = scmp.ne.s32.totalorder %s705_s0, %s546_s16  ;;  %s17_s13 = int_to_ptr.vmem [resolvable:$true] %s16_s13 }
   0x4   :  { %p550_p1 = scmp.lt.u32.totalorder %s546_s16, %s705_s0 }
   0x6   :  { %p552_p2 = pnand %p550_p1, %p547_p0 }
   0x8   :  { %555 = shalt.err (!%p552_p2)
}
   0x9   :  { %s556_s21 = scalar_lea.vmem %s17_s13, 256  ;;  %p561_p4 = scmp.lt.s32.totalorder %s17_s13, %s17_s13 }
   0xa   :  { %p557_p3 = scmp.ne.s32.totalorder %s17_s13, %s556_s21  ;;  %p562_p5 = scmp.lt.s32.totalorder %s556_s21, %s556_s21 }
   0xc   :  { %p563_p6 = por %p562_p5, %p561_p4 }
   0xe   :  { %p564_p7 = pnand %p563_p6, %p557_p3 }
  0x10   :  { %567 = shalt.err (!%p564_p7)
}
  0x11   :  { %s619_s22 = smov 128   ;;  %s620_s23 = smov 8  }
  0x12   :  { %22 = dma.hbm_to_vmem [thread:$0]  %s705_s0, 256, %s17_s13, [#allocation3], %s619_s22, %s619_s22, %s620_s23  }
  0x13   :  { %s621_s26 = smov [#allocation5]   ;;  %s568_s30 = scalar_lea.hbm %s706_s1, 512 }
  0x14   :  { %s28_s27 = sshll.u32 %s621_s26, 4  ;;  %p569_p8 = scmp.ne.s32.totalorder %s706_s1, %s568_s30  ;;  %s29_s27 = int_to_ptr.vmem [resolvable:$true] %s28_s27 }
  0x15   :  { %p572_p9 = scmp.lt.u32.totalorder %s568_s30, %s706_s1 }
  0x17   :  { %p574_p10 = pnand %p572_p9, %p569_p8 }
  0x19   :  { %577 = shalt.err (!%p574_p10)
}
  0x1a   :  { %s578_s8 = scalar_lea.vmem %s29_s27, 512  ;;  %p583_p12 = scmp.lt.s32.totalorder %s29_s27, %s29_s27 }
  0x1b   :  { %p579_p11 = scmp.ne.s32.totalorder %s29_s27, %s578_s8  ;;  %p584_p13 = scmp.lt.s32.totalorder %s578_s8, %s578_s8 }
  0x1d   :  { %p585_p0 = por %p584_p13, %p583_p12 }
  0x1f   :  { %p586_p1 = pnand %p585_p0, %p579_p11 }
  0x21   :  { %589 = shalt.err (!%p586_p1)
}
  0x22   :  { %34 = dma.hbm_to_vmem [thread:$0]  %s706_s1, 512, %s29_s27, [#allocation6], %s619_s22, %s619_s22, %s620_s23  }
  0x23   :  { %612 = dma.done.wait [#allocation3], 256  }
  0x24   :  { %613 = vsyncadd [#allocation3], 4294967040 }
  0x25   :  { %614 = dma.done.wait [#allocation6], 512  }
  0x26   :  { %615 = vsyncadd [#allocation6], 4294966784  ;;  %v622_v0 = vmov 0.0   ;;  %vm623_vm0 = vmmov 0   ;;  %vm45_vm1 = vcmask 261120   ;;  %v43_v1 = vld [vmem:[#allocation2] sm:$0xff] }
  0x27   :  { %492 = vmatprep.subr.mxu1 %v622_v0  ;;  %494 = vmatprep.mubr.msk.f32.mxu1 %vm623_vm0, %v622_v0  ;;  %v44_v2 = vld [vmem:[#allocation2 + $0x8] sm:$0xff]  ;;  %vm194_vm2 = vcmask 64512   ;;  %v351_v13 = vld [vmem:[#allocation5] sm:$0xff]  ;;  %v352_v14 = vld [vmem:[#allocation5 + $0x8] sm:$0xff]  ;;  %s624_s11 = smov [#allocation7]  }
  0x28   :  { %502 = vmatprep.subr.mxu0 %v622_v0  ;;  %504 = vmatprep.mubr.msk.f32.mxu0 %vm623_vm0, %v622_v0  ;;  %v523_v16 = vpack.c.bf16 %v352_v14, %v351_v13  ;;  %v353_v20 = vld [vmem:[#allocation5 + $0x10] sm:$0xff]  ;;  %v354_v21 = vld [vmem:[#allocation5 + $0x18] sm:$0xff]  ;;  %s456_s12 = sshll.u32 %s624_s11, 4  ;;  %s457_s12 = int_to_ptr.vmem [resolvable:$true] %s456_s12 }
  0x29   :  { %493 = vmatpush3.xpose.msk.msra.mxu1 %vm45_vm1, %v43_v1  ;;  %v527_v22 = vpack.c.bf16 %v354_v21, %v353_v20  ;;  %v477_v27 = vld [vmem:[%s707_s2] ss:$0 sm:$0xff]  ;;  %s590_s13 = scalar_lea.vmem %s457_s12, 256  ;;  %p595_p3 = scmp.lt.s32.totalorder %s457_s12, %s457_s12 }
  0x2a   :  { %497 = vmatprep.subr.mxu1 %v622_v0  ;;  %p591_p2 = scmp.ne.s32.totalorder %s457_s12, %s590_s13  ;;  %p596_p4 = scmp.lt.s32.totalorder %s590_s13, %s590_s13 }
  0x2c   :  { %495 = vmatmul.mubr.msk.f32.vlgmr.msra.gmra.mrb[0].mxu1 %vm45_vm1, %v43_v1  ;;  %p597_p5 = por %p596_p4, %p595_p3 }
  0x2d   :  { %498 = vmatpush3.xpose.msk.msra.mxu1 %vm45_vm1, %v44_v2  ;;  %499 = vmatprep.mubr.msk.f32.mxu1 %vm623_vm0, %v622_v0 }
  0x2e   :  { %507 = vmatprep.subr.mxu1 %v622_v0  ;;  %p598_p6 = pnand %p597_p5, %p591_p2 }
  0x30   :  { %500 = vmatmul.mubr.msk.f32.vlgmr.msra.gmra.mrb[2].mxu1 %vm45_vm1, %v44_v2 }
  0x31   :  { %509 = vmatprep.mubr.msk.f32.mxu1 %vm623_vm0, %v622_v0 }
  0xff   :  { %v115_v3 = vpop.f32.mrb[0].mxu1 }
 0x100   :  { %v192_v4 = vmax.f32 %v115_v3, 0.0  ;;  %v496_v5 = vpop.f32.mrb[1].mxu1 }
 0x102   :  { %v195_v6 = vsel %vm194_vm2, %v192_v4, 0.0 }
 0x103   :  { %196 = vadd.xlane.f32.xlu0 %v195_v6  ;;  %v188_v7 = vpop.f32.mrb[2].mxu1 }
 0x104   :  { %v193_v8 = vmax.f32 %v188_v7, 0.0  ;;  %v501_v9 = vpop.f32.mrb[3].mxu1 }
 0x106   :  { %v198_v10 = vsel %vm194_vm2, %v193_v8, 0.0 }
 0x107   :  { %199 = vadd.xlane.f32.xlu0 %v198_v10 }
 0x190   :  { %v197_v11 = vpop.xlane.xlu0 %196 }
 0x191   :  { %538 = vrcp.f32 %v197_v11 }
 0x194   :  { %v200_v12 = vpop.xlane.xlu0 %199 }
 0x195   :  { %540 = vrcp.f32 %v200_v12 }
 0x19b   :  { %v539_v15 = vpop.eup %538 }
 0x19c   :  { %v203_v17 = vmul.f32 %v539_v15, %v43_v1 }
 0x19e   :  { %503 = vmatpush3.msra.mxu0 %v203_v17 }
 0x19f   :  { %v541_v18 = vpop.eup %540  ;;  %505 = vmatmul.mubr.msk.f32.vlgmr.msra.gmra.mrb[0].mxu0 %vm194_vm2, %v192_v4  ;;  %524 = vmatprep.subr.bf16.mxu0 %v523_v16 }
 0x1a0   :  { %v204_v19 = vmul.f32 %v541_v18, %v44_v2  ;;  %526 = vmatpush3.bf16.msra.mxu0 %v523_v16 }
 0x1a1   :  { %528 = vmatprep.subr.bf16.mxu0 %v527_v22 }
 0x1a2   :  { %508 = vmatpush3.msra.mxu1 %v204_v19 }
 0x1a3   :  { %510 = vmatmul.mubr.msk.f32.vlgmr.msra.gmra.mrb[4].mxu1 %vm194_vm2, %v193_v8 }
 0x1a4   :  { %530 = vmatpush3.bf16.msra.mxu0 %v527_v22 }
 0x272   :  { %v274_v23 = vpop.f32.mrb[0].mxu0 }
 0x273   :  { %v506_v24 = vpop.f32.mrb[1].mxu0  ;;  %520 = vmatprep.mubr.msk.f32.mxu0 %vm45_vm1, %v274_v23 }
 0x276   :  { %v347_v25 = vpop.f32.mrb[4].mxu1 }
 0x277   :  { %v511_v26 = vpop.f32.mrb[5].mxu1  ;;  %521 = vmatmul.mubr.msk.f32.vlgmr.msra.gmra.mrb[2].mxu0 %vm45_vm1, %v347_v25 }
 0x34a   :  { %v522_v28 = vpop.f32.mrb[2].mxu0 }
 0x34b   :  { %v444_v29 = vadd.f32 %v522_v28, %v477_v27  ;;  %v427_v30 = vpop.f32.mrb[3].mxu0 }
 0x34c   :  { %v443_v31 = vadd.f32 %v477_v27, %v427_v30 }
 0x34d   :  { %542 = vtanh.f32 %v444_v29 }
 0x34e   :  { %544 = vtanh.f32 %v443_v31 }
 0x357   :  { %v543_v32 = vpop.eup %542 }
 0x358   :  { %v545_v33 = vpop.eup %544  ;;  %v448_v34 = vadd.f32 %v543_v32, %v44_v2 }
 0x359   :  { %v447_v35 = vadd.f32 %v545_v33, %v43_v1 }
 0x35a   :  { %450 = vst.msk [vmem:[#allocation7 + $0x8] sm:$0xff] %vm45_vm1, %v448_v34 }
 0x35b   :  { %449 = vst.msk [vmem:[#allocation7] sm:$0xff] %vm45_vm1, %v447_v35 }
 0x35c   :  { %601 = shalt.err (!%p598_p6)
}
 0x35d   :  { %s602_s15 = scalar_lea.hbm %s708_s3, 256 }
 0x35e   :  { %p603_p7 = scmp.ne.s32.totalorder %s708_s3, %s602_s15  ;;  %p606_p8 = scmp.lt.u32.totalorder %s602_s15, %s708_s3 }
 0x360   :  { %p608_p9 = pnand %p606_p8, %p603_p7 }
 0x362   :  { %611 = shalt.err (!%p608_p9)
}
 0x363   :  { %462 = dma.vmem_to_hbm [thread:$0]  %s457_s12, 256, %s708_s3, [#allocation4], %s619_s22, %s619_s22, %s620_s23  }
 0x364   :  { %616 = dma.done.wait [#allocation4], 256  }
 0x365   :  { %617 = vsyncadd [#allocation4], 4294967040 }
 0x366   :  { %466 = vsyncpa [#allocation3], 1 }
 0x367   :  { %467 = vsyncpa [#allocation6], 1 }
 0x368   :  { %468 = vsyncpa [#allocation4], 1 }

</bundles_post_ra>
